<compile_context>
chip_gen: v5e
topology: v5e:2x2
jax: 0.10.0
libtpu: 0.0.40
codegen_flags: <defaults>
</compile_context>

<pallas_src>
import jax
import jax.numpy as jnp
from jax.experimental import pallas as pl
from jax.experimental.pallas import tpu as pltpu


def _round_up(x, m):
    return ((x + m - 1) // m) * m


def _resident_spec(shape):
    """BlockSpec for data whose block index never changes across the grid.

    Single-buffered (pl.Buffered(1)): the default double-buffering would waste VMEM on
    weights that are resident anyway.  Falls back to the default spec on jax versions
    without the pipeline_mode kwarg.
    """
    idx_map = lambda i, _n=len(shape): (0,) * _n
    try:
        return pl.BlockSpec(tuple(shape), idx_map, pipeline_mode=pl.Buffered(1))
    except TypeError:  # older jax without pipeline_mode on BlockSpec
        return pl.BlockSpec(tuple(shape), idx_map)


# ---------------------------------------------------------------------------
# Fused forward: one pallas_call for the whole SwissArmyLayer forward pass.
# ---------------------------------------------------------------------------
def swiss_army_forward(params, t_seq, one_hot_idx=None, input_embedding=None,
                       *, batch_tile=None):
    has_emb = one_hot_idx is not None
    has_inp = input_embedding is not None
    t_layers = params["t_layers"]
    layers = params["layers"]

    B, t_in = t_seq.shape
    t_dim = t_layers[-1][0].shape[1] if t_layers else t_in
    E = params["embedding"].shape[1] if has_emb else 0
    IE = input_embedding.shape[1] if has_inp else 0
    H = t_dim + E + IE
    dtype = t_seq.dtype
    n_t, n_h = len(t_layers), len(layers)

    # ---- batch tile: big enough to amortize per-grid-step overhead and fill the MXU
    # M dimension; multiple of 8 for fp32 sublane packing; capped at 256 so big batches
    # still give several grid steps to pipeline / shard across v7x's two TensorCores.
    if batch_tile is None:
        batch_tile = min(256, _round_up(B, 8))
    tb = batch_tile

    # ---- nn.Embedding lookup hoisted out of the kernel: one clamped gather, then the
    # (B, E) result is just another row-tiled kernel input.
    if has_emb:
        table = params["embedding"]
        idx = jnp.clip(one_hot_idx.astype(jnp.int32), 0, table.shape[0] - 1)
        emb_rows = jnp.take(table, idx, axis=0)               # (B, E), float32

    # ---- pad batch to a multiple of the batch tile ---------------------------
    B_pad = max(_round_up(B, tb), tb)
    if B_pad != B:
        pad = B_pad - B
        t_seq = jnp.pad(t_seq, ((0, pad), (0, 0)))
        if has_inp:
            input_embedding = jnp.pad(input_embedding, ((0, pad), (0, 0)))
        if has_emb:
            emb_rows = jnp.pad(emb_rows, ((0, pad), (0, 0)))
    grid = (B_pad // tb,)

    def row_spec(nf):
        return pl.BlockSpec((tb, nf), lambda i: (i, 0))

    # ---- assemble operands + specs -------------------------------------------
    operands, in_specs = [], []

    def add(arr, spec):
        operands.append(arr)
        in_specs.append(spec)

    add(t_seq, row_spec(t_in))
    if has_emb:
        add(emb_rows, row_spec(E))
    if has_inp:
        add(input_embedding, row_spec(IE))
    for (w, b) in t_layers:
        add(w, _resident_spec(w.shape))
        add(b, _resident_spec(b.shape))
    if n_h:
        # Split layer-0 weight along rows so the branch concat folds into the matmul.
        w0, b0 = layers[0]
        add(w0[0:t_dim], _resident_spec((t_dim, H)))
        off = t_dim
        if has_emb:
            add(w0[off:off + E], _resident_spec((E, H)))
            off += E
        if has_inp:
            add(w0[off:off + IE], _resident_spec((IE, H)))
        add(b0, _resident_spec(b0.shape))
        for (w, b) in layers[1:]:
            add(w, _resident_spec(w.shape))
            add(b, _resident_spec(b.shape))

    # ---- the fused kernel ----------------------------------------------------
    def kernel(*args):
        refs = iter(args[:-1])
        out_ref = args[-1]

        t_ref = next(refs)
        e_ref = next(refs) if has_emb else None
        inp_ref = next(refs) if has_inp else None
        t_wb = [(next(refs), next(refs)) for _ in range(n_t)]
        if n_h:
            w0_t_ref = next(refs)
            w0_e_ref = next(refs) if has_emb else None
            w0_i_ref = next(refs) if has_inp else None
            b0_ref = next(refs)
            rest_wb = [(next(refs), next(refs)) for _ in range(n_h - 1)]

        f32 = jnp.float32
        # TODO(synk): bf16 operand casts for the dots once hidden dims grow (v6e/v7x).

        # --- t-branch MLP: activations never leave vregs/VMEM, math stays f32 ---
        t = t_ref[...]
        for (w_r, b_r) in t_wb:
            t = jnp.maximum(
                jnp.dot(t, w_r[...], preferred_element_type=f32) + b_r[...], 0.0)

        if n_h:
            # --- layer 0: branch concat folded into a row-split matmul ---
            y = jnp.dot(t, w0_t_ref[...], preferred_element_type=f32)
            if has_emb:
                y = y + jnp.dot(e_ref[...], w0_e_ref[...], preferred_element_type=f32)
            if has_inp:
                y = y + jnp.dot(inp_ref[...], w0_i_ref[...], preferred_element_type=f32)
            x = jnp.maximum(y + b0_ref[...], 0.0)
            # --- remaining hidden layers ---
            for (w_r, b_r) in rest_wb:
                x = jnp.maximum(
                    jnp.dot(x, w_r[...], preferred_element_type=f32) + b_r[...], 0.0)
            out_ref[...] = x.astype(out_ref.dtype)
        else:
            # num_layers == 0: output is just the branch concatenation; build it in
            # registers and issue a single lane-dense store.
            parts = [t.astype(f32)]
            if has_emb:
                parts.append(e_ref[...].astype(f32))
            if has_inp:
                parts.append(inp_ref[...].astype(f32))
            out_ref[...] = jnp.concatenate(parts, axis=-1).astype(out_ref.dtype)

    # ---- cost estimate (scheduling hint for XLA around the fused call) -------
    mm_flops = 0
    if n_t:
        mm_flops += t_in * t_dim + (n_t - 1) * t_dim * t_dim
    mm_flops += n_h * H * H
    flops = max(2 * B_pad * mm_flops, 1)
    bytes_accessed = (sum(int(a.size) * a.dtype.itemsize for a in operands)
                      + B_pad * H * jnp.dtype(dtype).itemsize)

    grid_spec = pltpu.PrefetchScalarGridSpec(
        num_scalar_prefetch=0,
        grid=grid,
        in_specs=in_specs,
        out_specs=pl.BlockSpec((tb, H), lambda i: (i, 0)),
    )

    out = pl.pallas_call(
        kernel,
        out_shape=jax.ShapeDtypeStruct((B_pad, H), dtype),
        grid_spec=grid_spec,
        compiler_params=pltpu.CompilerParams(
            dimension_semantics=("parallel",)),
        cost_estimate=pl.CostEstimate(
            flops=flops, transcendentals=0, bytes_accessed=bytes_accessed),
    )(*operands)

    return out[:B] if B_pad != B else out


# ---------------------------------------------------------------------------
# Parameter init (deterministic, PyTorch-default-style; biases pre-shaped (1, d))
# ---------------------------------------------------------------------------
def init_params(key, t_seq_bits, t_layer_dim, t_num_layers, num_layers,
                one_hot_vocab_len=None, one_hot_embedding_dim=None,
                input_embedding_dim=None):
    keys = iter(jax.random.split(key, t_num_layers + num_layers + 4))

    def linear_init(k, fan_in, fan_out):
        k1, k2 = jax.random.split(k)
        bound = 1.0 / float(fan_in) ** 0.5
        w = jax.random.uniform(k1, (fan_in, fan_out), jnp.float32, -bound, bound)
        b = jax.random.uniform(k2, (1, fan_out), jnp.float32, -bound, bound)
        return w, b

    params = {}
    t_layers = []
    if t_num_layers > 0:
        t_layers.append(linear_init(next(keys), t_seq_bits, t_layer_dim))
        for _ in range(t_num_layers - 1):
            t_layers.append(linear_init(next(keys), t_layer_dim, t_layer_dim))
    else:
        t_layer_dim = t_seq_bits
    params["t_layers"] = t_layers

    hidden_dim = t_layer_dim
    if input_embedding_dim is not None:
        hidden_dim += input_embedding_dim
    if one_hot_vocab_len is not None and one_hot_embedding_dim is not None:
        hidden_dim += one_hot_embedding_dim
        emb = jax.random.normal(next(keys),
                                (one_hot_vocab_len + 1, one_hot_embedding_dim),
                                jnp.float32)
        emb = emb.at[one_hot_vocab_len].set(0.0)   # padding_idx row -> zeros
        params["embedding"] = emb

    params["layers"] = [linear_init(next(keys), hidden_dim, hidden_dim)
                        for _ in range(num_layers)]
    return params


# ---------------------------------------------------------------------------
# Pure-JAX reference (mirrors SwissArmyLayer.forward) for correctness check.
# ---------------------------------------------------------------------------
def reference_forward(params, t_seq, one_hot_idx=None, input_embedding=None):
    hp = jax.lax.Precision.HIGHEST
    t = t_seq
    for (w, b) in params["t_layers"]:
        t = jnp.maximum(jnp.dot(t, w, precision=hp) + b, 0.0)
    parts = [t]
    if one_hot_idx is not None:
        parts.append(jnp.take(params["embedding"], one_hot_idx, axis=0))
    if input_embedding is not None:
        parts.append(input_embedding)
    x = jnp.concatenate(parts, axis=-1)
    for (w, b) in params["layers"]:
        x = jnp.maximum(jnp.dot(x, w, precision=hp) + b, 0.0)
    return x


# ---------------------------------------------------------------------------
if __name__ == "__main__":
    key = jax.random.PRNGKey(0)
    kp, kt, ki, ke = jax.random.split(key, 4)

    # Dims chosen so the hidden/output width is 64 + 32 + 32 = 128 (lane-dense).
    B = 16
    t_seq_bits = 16
    t_layer_dim = 64
    t_num_layers = 2
    num_layers = 2
    one_hot_vocab_len = 10
    one_hot_embedding_dim = 32
    input_embedding_dim = 32

    params = init_params(kp, t_seq_bits, t_layer_dim, t_num_layers, num_layers,
                         one_hot_vocab_len=one_hot_vocab_len,
                         one_hot_embedding_dim=one_hot_embedding_dim,
                         input_embedding_dim=input_embedding_dim)

    t_seq = jax.random.normal(kt, (B, t_seq_bits), jnp.float32)
    # Indices in [0, vocab_len]; vocab_len itself is the padding index (zero row).
    one_hot_idx = jax.random.randint(ki, (B,), 0, one_hot_vocab_len + 1)
    input_embedding = jax.random.normal(ke, (B, input_embedding_dim), jnp.float32)

    out = swiss_army_forward(params, t_seq, one_hot_idx, input_embedding)
    out = jax.block_until_ready(out)

    hidden_dim = t_layer_dim + one_hot_embedding_dim + input_embedding_dim
    assert out.shape == (B, hidden_dim), out.shape
    assert out.dtype == jnp.float32
    assert bool(jnp.all(out >= 0.0))            # last op is ReLU

    ref = reference_forward(params, t_seq, one_hot_idx, input_embedding)
    assert bool(jnp.allclose(out, ref, rtol=1e-4, atol=1e-4)), \
        float(jnp.max(jnp.abs(out - ref)))
    print("KERNEL_OK")
</pallas_src>

<mosaic_0001>
module attributes {stable_mosaic.version = 11 : i64} {
  func.func @kernel(%arg0: i32, %arg1: memref<16x16xf32, #tpu.memory_space<vmem>>, %arg2: memref<16x32xf32, #tpu.memory_space<vmem>>, %arg3: memref<16x32xf32, #tpu.memory_space<vmem>>, %arg4: memref<16x64xf32, #tpu.memory_space<vmem>>, %arg5: memref<1x64xf32, #tpu.memory_space<vmem>>, %arg6: memref<64x64xf32, #tpu.memory_space<vmem>>, %arg7: memref<1x64xf32, #tpu.memory_space<vmem>>, %arg8: memref<64x128xf32, #tpu.memory_space<vmem>>, %arg9: memref<32x128xf32, #tpu.memory_space<vmem>>, %arg10: memref<32x128xf32, #tpu.memory_space<vmem>>, %arg11: memref<1x128xf32, #tpu.memory_space<vmem>>, %arg12: memref<128x128xf32, #tpu.memory_space<vmem>>, %arg13: memref<1x128xf32, #tpu.memory_space<vmem>>, %arg14: memref<16x128xf32, #tpu.memory_space<vmem>>) attributes {dimension_semantics = [#tpu.dimension_semantics<parallel>], iteration_bounds = array<i64: 1>, scalar_prefetch = 0 : i64, scratch_operands = 0 : i64, tpu.core_type = #tpu.core_type<tc>, window_params = [{transform_indices = @transform_0, window_bounds = array<i64: 16, 16>}, {transform_indices = @transform_1, window_bounds = array<i64: 16, 32>}, {transform_indices = @transform_2, window_bounds = array<i64: 16, 32>}, {pipeline_mode = #tpu.pipeline_mode<synchronous>, transform_indices = @transform_3, window_bounds = array<i64: 16, 64>}, {pipeline_mode = #tpu.pipeline_mode<synchronous>, transform_indices = @transform_4, window_bounds = array<i64: 1, 64>}, {pipeline_mode = #tpu.pipeline_mode<synchronous>, transform_indices = @transform_5, window_bounds = array<i64: 64, 64>}, {pipeline_mode = #tpu.pipeline_mode<synchronous>, transform_indices = @transform_6, window_bounds = array<i64: 1, 64>}, {pipeline_mode = #tpu.pipeline_mode<synchronous>, transform_indices = @transform_7, window_bounds = array<i64: 64, 128>}, {pipeline_mode = #tpu.pipeline_mode<synchronous>, transform_indices = @transform_8, window_bounds = array<i64: 32, 128>}, {pipeline_mode = #tpu.pipeline_mode<synchronous>, transform_indices = @transform_9, window_bounds = array<i64: 32, 128>}, {pipeline_mode = #tpu.pipeline_mode<synchronous>, transform_indices = @transform_10, window_bounds = array<i64: 1, 128>}, {pipeline_mode = #tpu.pipeline_mode<synchronous>, transform_indices = @transform_11, window_bounds = array<i64: 128, 128>}, {pipeline_mode = #tpu.pipeline_mode<synchronous>, transform_indices = @transform_12, window_bounds = array<i64: 1, 128>}, {transform_indices = @transform_13, window_bounds = array<i64: 16, 128>}]} {
    %c0 = arith.constant 0 : index
    %c0_0 = arith.constant 0 : index
    %0 = vector.load %arg1[%c0, %c0_0] : memref<16x16xf32, #tpu.memory_space<vmem>>, vector<16x16xf32>
    %c0_1 = arith.constant 0 : index
    %c0_2 = arith.constant 0 : index
    %1 = vector.load %arg4[%c0_1, %c0_2] : memref<16x64xf32, #tpu.memory_space<vmem>>, vector<16x64xf32>
    %cst = arith.constant dense<0.000000e+00> : vector<16x64xf32>
    %2 = tpu.matmul %0, %1, %cst {dimension_numbers = #tpu.dot_dimension_numbers<[1], [0], [0], [1], [0, 0, 1, 1], [], []>} : vector<16x16xf32>, vector<16x64xf32>, vector<16x64xf32> -> vector<16x64xf32>
    %c0_3 = arith.constant 0 : index
    %c0_4 = arith.constant 0 : index
    %3 = vector.load %arg5[%c0_3, %c0_4] : memref<1x64xf32, #tpu.memory_space<vmem>>, vector<1x64xf32>
    %4 = vector.broadcast %3 : vector<1x64xf32> to vector<16x64xf32>
    %5 = arith.addf %2, %4 : vector<16x64xf32>
    %cst_5 = arith.constant 0.000000e+00 : f32
    %6 = vector.broadcast %cst_5 : f32 to vector<16x64xf32>
    %7 = arith.maximumf %5, %6 : vector<16x64xf32>
    %c0_6 = arith.constant 0 : index
    %c0_7 = arith.constant 0 : index
    %8 = vector.load %arg6[%c0_6, %c0_7] : memref<64x64xf32, #tpu.memory_space<vmem>>, vector<64x64xf32>
    %cst_8 = arith.constant dense<0.000000e+00> : vector<16x64xf32>
    %9 = tpu.matmul %7, %8, %cst_8 {dimension_numbers = #tpu.dot_dimension_numbers<[1], [0], [0], [1], [0, 0, 1, 1], [], []>} : vector<16x64xf32>, vector<64x64xf32>, vector<16x64xf32> -> vector<16x64xf32>
    %c0_9 = arith.constant 0 : index
    %c0_10 = arith.constant 0 : index
    %10 = vector.load %arg7[%c0_9, %c0_10] : memref<1x64xf32, #tpu.memory_space<vmem>>, vector<1x64xf32>
    %11 = vector.broadcast %10 : vector<1x64xf32> to vector<16x64xf32>
    %12 = arith.addf %9, %11 : vector<16x64xf32>
    %cst_11 = arith.constant 0.000000e+00 : f32
    %13 = vector.broadcast %cst_11 : f32 to vector<16x64xf32>
    %14 = arith.maximumf %12, %13 : vector<16x64xf32>
    %c0_12 = arith.constant 0 : index
    %c0_13 = arith.constant 0 : index
    %15 = vector.load %arg8[%c0_12, %c0_13] : memref<64x128xf32, #tpu.memory_space<vmem>>, vector<64x128xf32>
    %cst_14 = arith.constant dense<0.000000e+00> : vector<16x128xf32>
    %16 = tpu.matmul %14, %15, %cst_14 {dimension_numbers = #tpu.dot_dimension_numbers<[1], [0], [0], [1], [0, 0, 1, 1], [], []>} : vector<16x64xf32>, vector<64x128xf32>, vector<16x128xf32> -> vector<16x128xf32>
    %c0_15 = arith.constant 0 : index
    %c0_16 = arith.constant 0 : index
    %17 = vector.load %arg2[%c0_15, %c0_16] : memref<16x32xf32, #tpu.memory_space<vmem>>, vector<16x32xf32>
    %c0_17 = arith.constant 0 : index
    %c0_18 = arith.constant 0 : index
    %18 = vector.load %arg9[%c0_17, %c0_18] : memref<32x128xf32, #tpu.memory_space<vmem>>, vector<32x128xf32>
    %cst_19 = arith.constant dense<0.000000e+00> : vector<16x128xf32>
    %19 = tpu.matmul %17, %18, %cst_19 {dimension_numbers = #tpu.dot_dimension_numbers<[1], [0], [0], [1], [0, 0, 1, 1], [], []>} : vector<16x32xf32>, vector<32x128xf32>, vector<16x128xf32> -> vector<16x128xf32>
    %20 = arith.addf %16, %19 : vector<16x128xf32>
    %c0_20 = arith.constant 0 : index
    %c0_21 = arith.constant 0 : index
    %21 = vector.load %arg3[%c0_20, %c0_21] : memref<16x32xf32, #tpu.memory_space<vmem>>, vector<16x32xf32>
    %c0_22 = arith.constant 0 : index
    %c0_23 = arith.constant 0 : index
    %22 = vector.load %arg10[%c0_22, %c0_23] : memref<32x128xf32, #tpu.memory_space<vmem>>, vector<32x128xf32>
    %cst_24 = arith.constant dense<0.000000e+00> : vector<16x128xf32>
    %23 = tpu.matmul %21, %22, %cst_24 {dimension_numbers = #tpu.dot_dimension_numbers<[1], [0], [0], [1], [0, 0, 1, 1], [], []>} : vector<16x32xf32>, vector<32x128xf32>, vector<16x128xf32> -> vector<16x128xf32>
    %24 = arith.addf %20, %23 : vector<16x128xf32>
    %c0_25 = arith.constant 0 : index
    %c0_26 = arith.constant 0 : index
    %25 = vector.load %arg11[%c0_25, %c0_26] : memref<1x128xf32, #tpu.memory_space<vmem>>, vector<1x128xf32>
    %26 = vector.broadcast %25 : vector<1x128xf32> to vector<16x128xf32>
    %27 = arith.addf %24, %26 : vector<16x128xf32>
    %cst_27 = arith.constant 0.000000e+00 : f32
    %28 = vector.broadcast %cst_27 : f32 to vector<16x128xf32>
    %29 = arith.maximumf %27, %28 : vector<16x128xf32>
    %c0_28 = arith.constant 0 : index
    %c0_29 = arith.constant 0 : index
    %30 = vector.load %arg12[%c0_28, %c0_29] : memref<128x128xf32, #tpu.memory_space<vmem>>, vector<128x128xf32>
    %cst_30 = arith.constant dense<0.000000e+00> : vector<16x128xf32>
    %31 = tpu.matmul %29, %30, %cst_30 {dimension_numbers = #tpu.dot_dimension_numbers<[1], [0], [0], [1], [0, 0, 1, 1], [], []>} : vector<16x128xf32>, vector<128x128xf32>, vector<16x128xf32> -> vector<16x128xf32>
    %c0_31 = arith.constant 0 : index
    %c0_32 = arith.constant 0 : index
    %32 = vector.load %arg13[%c0_31, %c0_32] : memref<1x128xf32, #tpu.memory_space<vmem>>, vector<1x128xf32>
    %33 = vector.broadcast %32 : vector<1x128xf32> to vector<16x128xf32>
    %34 = arith.addf %31, %33 : vector<16x128xf32>
    %cst_33 = arith.constant 0.000000e+00 : f32
    %35 = vector.broadcast %cst_33 : f32 to vector<16x128xf32>
    %36 = arith.maximumf %34, %35 : vector<16x128xf32>
    %c0_34 = arith.constant 0 : index
    %c0_35 = arith.constant 0 : index
    %37 = vector.load %arg14[%c0_34, %c0_35] : memref<16x128xf32, #tpu.memory_space<vmem>>, vector<16x128xf32>
    tpu.vector_store %arg14[%c0_34, %c0_35], %36 {strides = array<i32>} : memref<16x128xf32, #tpu.memory_space<vmem>>, vector<16x128xf32>,
    return
  }
  func.func @transform_0(%arg0: i32) -> (i32, i32) {
    %c0_i32 = arith.constant 0 : i32
    %c0_i32_0 = arith.constant 0 : i32
    return %arg0, %c0_i32 : i32, i32
  }
  func.func @transform_1(%arg0: i32) -> (i32, i32) {
    %c0_i32 = arith.constant 0 : i32
    %c0_i32_0 = arith.constant 0 : i32
    return %arg0, %c0_i32 : i32, i32
  }
  func.func @transform_2(%arg0: i32) -> (i32, i32) {
    %c0_i32 = arith.constant 0 : i32
    %c0_i32_0 = arith.constant 0 : i32
    return %arg0, %c0_i32 : i32, i32
  }
  func.func @transform_3(%arg0: i32) -> (i32, i32) {
    %c0_i32 = arith.constant 0 : i32
    %c0_i32_0 = arith.constant 0 : i32
    %c0_i32_1 = arith.constant 0 : i32
    return %c0_i32, %c0_i32_0 : i32, i32
  }
  func.func @transform_4(%arg0: i32) -> (i32, i32) {
    %c0_i32 = arith.constant 0 : i32
    %c0_i32_0 = arith.constant 0 : i32
    %c0_i32_1 = arith.constant 0 : i32
    return %c0_i32, %c0_i32_0 : i32, i32
  }
  func.func @transform_5(%arg0: i32) -> (i32, i32) {
    %c0_i32 = arith.constant 0 : i32
    %c0_i32_0 = arith.constant 0 : i32
    %c0_i32_1 = arith.constant 0 : i32
    return %c0_i32, %c0_i32_0 : i32, i32
  }
  func.func @transform_6(%arg0: i32) -> (i32, i32) {
    %c0_i32 = arith.constant 0 : i32
    %c0_i32_0 = arith.constant 0 : i32
    %c0_i32_1 = arith.constant 0 : i32
    return %c0_i32, %c0_i32_0 : i32, i32
  }
  func.func @transform_7(%arg0: i32) -> (i32, i32) {
    %c0_i32 = arith.constant 0 : i32
    %c0_i32_0 = arith.constant 0 : i32
    %c0_i32_1 = arith.constant 0 : i32
    return %c0_i32, %c0_i32_0 : i32, i32
  }
  func.func @transform_8(%arg0: i32) -> (i32, i32) {
    %c0_i32 = arith.constant 0 : i32
    %c0_i32_0 = arith.constant 0 : i32
    %c0_i32_1 = arith.constant 0 : i32
    return %c0_i32, %c0_i32_0 : i32, i32
  }
  func.func @transform_9(%arg0: i32) -> (i32, i32) {
    %c0_i32 = arith.constant 0 : i32
    %c0_i32_0 = arith.constant 0 : i32
    %c0_i32_1 = arith.constant 0 : i32
    return %c0_i32, %c0_i32_0 : i32, i32
  }
  func.func @transform_10(%arg0: i32) -> (i32, i32) {
    %c0_i32 = arith.constant 0 : i32
    %c0_i32_0 = arith.constant 0 : i32
    %c0_i32_1 = arith.constant 0 : i32
    return %c0_i32, %c0_i32_0 : i32, i32
  }
  func.func @transform_11(%arg0: i32) -> (i32, i32) {
    %c0_i32 = arith.constant 0 : i32
    %c0_i32_0 = arith.constant 0 : i32
    %c0_i32_1 = arith.constant 0 : i32
    return %c0_i32, %c0_i32_0 : i32, i32
  }
  func.func @transform_12(%arg0: i32) -> (i32, i32) {
    %c0_i32 = arith.constant 0 : i32
    %c0_i32_0 = arith.constant 0 : i32
    %c0_i32_1 = arith.constant 0 : i32
    return %c0_i32, %c0_i32_0 : i32, i32
  }
  func.func @transform_13(%arg0: i32) -> (i32, i32) {
    %c0_i32 = arith.constant 0 : i32
    %c0_i32_0 = arith.constant 0 : i32
    return %arg0, %c0_i32 : i32, i32
  }
}

</mosaic_0001>

<bundles_post_ra>
// kernel: tpu_custom_call.1
= control target key start
LH: loop header
LB: loop body
LE: loop exit
PB: predicated region body
PF: predicated region fallthrough
CT: control target
= control target key end

     0   :  { %18 = vsyncpa [#allocation3], 0  ;;  %s897_s0 = inlined_call_operand.hbm [shape: f32[16,16], index: 0, kind: input, shape index: {}]   ;;  %s898_s1 = inlined_call_operand.hbm [shape: f32[16,32], index: 1, kind: input, shape index: {}]   ;;  %s899_s2 = inlined_call_operand.hbm [shape: f32[16,32], index: 2, kind: input, shape index: {}]   ;;  %s900_s3 = inlined_call_operand.hbm [shape: f32[16,64], index: 3, kind: input, shape index: {}]   ;;  %s901_s4 = inlined_call_operand.vmem [shape: f32[1,64], index: 4, kind: input, shape index: {}]   ;;  %s902_s5 = inlined_call_operand.hbm [shape: f32[64,64], index: 5, kind: input, shape index: {}]   ;;  %s903_s6 = inlined_call_operand.vmem [shape: f32[1,64], index: 6, kind: input, shape index: {}]   ;;  %s904_s7 = inlined_call_operand.hbm [shape: f32[64,128], index: 7, kind: input, shape index: {}]   ;;  %s905_s8 = inlined_call_operand.hbm [shape: f32[32,128], index: 8, kind: input, shape index: {}]   ;;  %s906_s9 = inlined_call_operand.hbm [shape: f32[32,128], index: 9, kind: input, shape index: {}]   ;;  %s907_s10 = inlined_call_operand.vmem [shape: f32[1,128], index: 10, kind: input, shape index: {}]   ;;  %s908_s11 = inlined_call_operand.hbm [shape: f32[128,128], index: 11, kind: input, shape index: {}]   ;;  %s909_s12 = inlined_call_operand.vmem [shape: f32[1,128], index: 12, kind: input, shape index: {}]   ;;  %s910_s13 = inlined_call_operand.hbm [shape: f32[16,128], index: 13, kind: output, shape index: {}]  }
   0x1   :  { %19 = vsyncpa [#allocation6], 0 }
   0x2   :  { %20 = vsyncpa [#allocation9], 0 }
   0x3   :  { %21 = vsyncpa [#allocation12], 0 }
   0x4   :  { %22 = vsyncpa [#allocation15], 0 }
   0x5   :  { %23 = vsyncpa [#allocation4], 0  ;;  %s41_s27 = sshll.u32 %s898_s1, 4  ;;  %s735_s28 = smov [#allocation5]   ;;  %s42_s27 = int_to_ptr.hbm [resolvable:$true] %s41_s27 }
   0x6   :  { %s43_s29 = sshll.u32 %s735_s28, 4  ;;  %s67_s15 = sshll.u32 %s900_s3, 4  ;;  %s44_s29 = int_to_ptr.vmem [resolvable:$true] %s43_s29  ;;  %s68_s15 = int_to_ptr.hbm [resolvable:$true] %s67_s15 }
   0x7   :  { %s736_s16 = smov 128   ;;  %s737_s17 = smov 8  }
   0x8   :  { %49 = dma.hbm_to_vmem [thread:$0]  %s42_s27, 256, %s44_s29, [#allocation6], %s736_s16, %s736_s16, %s737_s17  }
   0x9   :  { %s738_s18 = smov [#allocation8]   ;;  %s97_s1 = sshll.u32 %s904_s7, 4  ;;  %s98_s1 = int_to_ptr.hbm [resolvable:$true] %s97_s1 }
   0xa   :  { %s69_s19 = sshll.u32 %s738_s18, 4  ;;  %s123_s23 = sshll.u32 %s906_s9, 4  ;;  %s70_s19 = int_to_ptr.vmem [resolvable:$true] %s69_s19  ;;  %s124_s23 = int_to_ptr.hbm [resolvable:$true] %s123_s23 }
   0xb   :  { %75 = dma.hbm_to_vmem [thread:$0]  %s68_s15, 256, %s70_s19, [#allocation9], %s736_s16, %s736_s16, %s737_s17  }
   0xc   :  { %s739_s24 = smov [#allocation11]   ;;  %s740_s26 = smov [#allocation14]  }
   0xd   :  { %s99_s25 = sshll.u32 %s739_s24, 4  ;;  %s125_s7 = sshll.u32 %s740_s26, 4  ;;  %s100_s25 = int_to_ptr.vmem [resolvable:$true] %s99_s25  ;;  %s126_s7 = int_to_ptr.vmem [resolvable:$true] %s125_s7 }
   0xe   :  { %105 = dma.hbm_to_vmem [thread:$0]  %s98_s1, 1024, %s100_s25, [#allocation12], %s736_s16, %s736_s16, %s737_s17  }
   0xf   :  { %s28_s29 = sshll.u32 %s897_s0, 4  ;;  %s54_s14 = sshll.u32 %s899_s2, 4  ;;  %s29_s29 = int_to_ptr.hbm [resolvable:$true] %s28_s29  ;;  %s55_s14 = int_to_ptr.hbm [resolvable:$true] %s54_s14 }
  0x10   :  { %131 = dma.hbm_to_vmem [thread:$0]  %s124_s23, 512, %s126_s7, [#allocation15], %s736_s16, %s736_s16, %s737_s17  }
  0x11   :  { %s741_s15 = smov [#allocation2]   ;;  %s742_s19 = smov [#allocation7]  }
  0x12   :  { %s30_s18 = sshll.u32 %s741_s15, 4  ;;  %s56_s0 = sshll.u32 %s742_s19, 4  ;;  %s31_s18 = int_to_ptr.vmem [resolvable:$true] %s30_s18  ;;  %s57_s0 = int_to_ptr.vmem [resolvable:$true] %s56_s0 }
  0x13   :  { %36 = dma.hbm_to_vmem [thread:$0]  %s29_s29, 256, %s31_s18, [#allocation3], %s736_s16, %s736_s16, %s737_s17  }
  0x14   :  { %s82_s1 = sshll.u32 %s902_s5, 4  ;;  %s110_s22 = sshll.u32 %s905_s8, 4  ;;  %s83_s1 = int_to_ptr.hbm [resolvable:$true] %s82_s1  ;;  %s111_s22 = int_to_ptr.hbm [resolvable:$true] %s110_s22 }
  0x15   :  { %62 = dma.hbm_to_vmem [thread:$0]  %s55_s14, 256, %s57_s0, [#allocation6], %s736_s16, %s736_s16, %s737_s17  }
  0x16   :  { %s743_s23 = smov [#allocation10]   ;;  %s744_s25 = smov [#allocation13]  }
  0x17   :  { %s84_s24 = sshll.u32 %s743_s23, 4  ;;  %s112_s5 = sshll.u32 %s744_s25, 4  ;;  %s85_s24 = int_to_ptr.vmem [resolvable:$true] %s84_s24  ;;  %s113_s5 = int_to_ptr.vmem [resolvable:$true] %s112_s5 }
  0x18   :  { %90 = dma.hbm_to_vmem [thread:$0]  %s83_s1, 1024, %s85_s24, [#allocation9], %s736_s16, %s736_s16, %s737_s17  }
  0x19   :  { %s138_s27 = sshll.u32 %s908_s11, 4  ;;  %s745_s8 = smov [#allocation16]   ;;  %s139_s27 = int_to_ptr.hbm [resolvable:$true] %s138_s27 }
  0x1a   :  { %118 = dma.hbm_to_vmem [thread:$0]  %s111_s22, 512, %s113_s5, [#allocation12], %s736_s16, %s736_s16, %s737_s17  }
  0x1b   :  { %s140_s28 = sshll.u32 %s745_s8, 4  ;;  %s141_s28 = int_to_ptr.vmem [resolvable:$true] %s140_s28 }
  0x1c   :  { %146 = dma.hbm_to_vmem [thread:$0]  %s139_s27, 2048, %s141_s28, [#allocation15], %s736_s16, %s736_s16, %s737_s17  }
  0x1d   :  { %723 = dma.done.wait [#allocation3], 256  }
  0x1e   :  { %724 = vsyncadd [#allocation3], 4294967040 }
  0x1f   :  { %725 = dma.done.wait [#allocation6], 512  }
  0x20   :  { %726 = vsyncadd [#allocation6], 4294966784 }
  0x21   :  { %727 = dma.done.wait [#allocation9], 1280  }
  0x22   :  { %728 = vsyncadd [#allocation9], 4294966016 }
  0x23   :  { %729 = dma.done.wait [#allocation12], 1536  }
  0x24   :  { %730 = vsyncadd [#allocation12], 4294965760 }
  0x25   :  { %731 = dma.done.wait [#allocation15], 2560  }
  0x26   :  { %732 = vsyncadd [#allocation15], 4294964736  ;;  %v188_v0 = vld [vmem:[#allocation8 + $0x8] sm:$0xff]  ;;  %v187_v1 = vld [vmem:[#allocation8] sm:$0xff]  ;;  %vm193_vm0 = vcmask 130048   ;;  %vm283_vm1 = vcmask 261120  }
  0x27   :  { %214 = vmatpush.msra.mxu0 %v188_v0  ;;  %v185_v2 = vld [vmem:[#allocation2] sm:$0xff]  ;;  %v232_v3 = vld [vmem:[#allocation10 + $0x38] sm:$0xff]  ;;  %v231_v4 = vld [vmem:[#allocation10 + $0x30] sm:$0xff]  ;;  %vm237_vm2 = vcmask 523264   ;;  %s440_s20 = sshll.u32 %s910_s13, 4  ;;  %s441_s20 = int_to_ptr.hbm [resolvable:$true] %s440_s20 }
  0x28   :  { %252 = vmatpush.msra.mxu1 %v232_v3  ;;  %v230_v5 = vld [vmem:[#allocation10 + $0x28] sm:$0xff]  ;;  %v229_v6 = vld [vmem:[#allocation10 + $0x20] sm:$0xff]  ;;  %v228_v7 = vld [vmem:[#allocation10 + $0x18] sm:$0xff] }
  0x29   :  { %215 = vmatpush.msra.mxu0 %v187_v1  ;;  %v186_v8 = vld [vmem:[#allocation2 + $0x8] sm:$0xff]  ;;  %v227_v9 = vld [vmem:[#allocation10 + $0x10] sm:$0xff]  ;;  %v225_v11 = vld [vmem:[#allocation10] sm:$0xff] }
  0x2a   :  { %457 = vmatmul.msk.f32.vlgmr.msra.gmra.mxu0 %vm193_vm0, %v185_v2  ;;  %253 = vmatpush.msra.mxu1 %v231_v4  ;;  %v226_v10 = vld [vmem:[#allocation10 + $0x8] sm:$0xff]  ;;  %v282_v12 = vld [vmem:[#allocation13 + $0x18] sm:$0xff]  ;;  %v281_v13 = vld [vmem:[#allocation13 + $0x10] sm:$0xff] }
  0x2b   :  { %302 = vmatpush.msra.mxu3 %v282_v12  ;;  %v280_v14 = vld [vmem:[#allocation13 + $0x8] sm:$0xff]  ;;  %v347_v15 = vld [vmem:[#allocation14 + $0x18] sm:$0xff]  ;;  %v279_v16 = vld [vmem:[#allocation13] sm:$0xff] }
  0x2c   :  { %254 = vmatpush.msra.mxu1 %v230_v5  ;;  %366 = vmatpush.msrb.mxu0 %v347_v15  ;;  %v277_v17 = vld [vmem:[#allocation5] sm:$0xff]  ;;  %v276_v18 = vld [vmem:[#allocation11 + $0x38] sm:$0xff]  ;;  %v274_v20 = vld [vmem:[#allocation11 + $0x28] sm:$0xff] }
  0x2d   :  { %303 = vmatpush.msra.mxu3 %v281_v13  ;;  %v275_v19 = vld [vmem:[#allocation11 + $0x30] sm:$0xff]  ;;  %v273_v21 = vld [vmem:[#allocation11 + $0x20] sm:$0xff]  ;;  %v278_v22 = vld [vmem:[#allocation5 + $0x8] sm:$0xff] }
  0x2e   :  { %255 = vmatpush.msra.mxu1 %v229_v6  ;;  %v272_v23 = vld [vmem:[#allocation11 + $0x18] sm:$0xff]  ;;  %v479_v24 = vld [vmem:[%s901_s4] ss:$0 sm:$0xff]  ;;  %v271_v25 = vld [vmem:[#allocation11 + $0x10] sm:$0xff] }
  0x2f   :  { %304 = vmatpush.msra.mxu3 %v280_v14  ;;  %v270_v32 = vld [vmem:[#allocation11 + $0x8] sm:$0xff]  ;;  %v346_v33 = vld [vmem:[#allocation14 + $0x10] sm:$0xff]  ;;  %v269_v34 = vld [vmem:[#allocation11] sm:$0xff] }
  0x30   :  { %256 = vmatpush.msra.mxu1 %v228_v7  ;;  %367 = vmatpush.msrb.mxu0 %v346_v33  ;;  %v345_v35 = vld [vmem:[#allocation14 + $0x8] sm:$0xff]  ;;  %v344_v36 = vld [vmem:[#allocation14] sm:$0xff]  ;;  %v402_v38 = vld [vmem:[#allocation16 + $0x78] sm:$0xff] }
  0x31   :  { %305 = vmatpush.msra.mxu3 %v279_v16  ;;  %v342_v37 = vld [vmem:[#allocation7] sm:$0xff]  ;;  %v401_v39 = vld [vmem:[#allocation16 + $0x70] sm:$0xff]  ;;  %407 = vmatpush.msra.mxu2 %v402_v38  ;;  %v400_v40 = vld [vmem:[#allocation16 + $0x68] sm:$0xff] }
  0x32   :  { %458 = vmatmul.msk.f32.gmra.mxu0 %vm193_vm0, %v186_v8  ;;  %257 = vmatpush.msra.mxu1 %v227_v9  ;;  %v399_v41 = vld [vmem:[#allocation16 + $0x60] sm:$0xff]  ;;  %v343_v42 = vld [vmem:[#allocation7 + $0x8] sm:$0xff]  ;;  %v398_v43 = vld [vmem:[#allocation16 + $0x58] sm:$0xff] }
  0x33   :  { %461 = vmatmul.msk.f32.vlgmr.msra.gmra.mxu3 %vm283_vm1, %v277_v17  ;;  %368 = vmatpush.msrb.mxu0 %v345_v35  ;;  %v397_v44 = vld [vmem:[#allocation16 + $0x50] sm:$0xff]  ;;  %v396_v45 = vld [vmem:[#allocation16 + $0x48] sm:$0xff]  ;;  %v395_v46 = vld [vmem:[#allocation16 + $0x40] sm:$0xff] }
  0x34   :  { %258 = vmatpush.msra.mxu1 %v226_v10  ;;  %327 = vmatpush.msrb.mxu3 %v276_v18  ;;  %v394_v47 = vld [vmem:[#allocation16 + $0x38] sm:$0xff]  ;;  %v480_v48 = vld [vmem:[%s903_s6] ss:$0 sm:$0xff]  ;;  %v393_v49 = vld [vmem:[#allocation16 + $0x30] sm:$0xff] }
  0x35   :  { %369 = vmatpush.msrb.mxu0 %v344_v36  ;;  %408 = vmatpush.msra.mxu2 %v401_v39  ;;  %v392_v50 = vld [vmem:[#allocation16 + $0x28] sm:$0xff]  ;;  %v391_v57 = vld [vmem:[#allocation16 + $0x20] sm:$0xff]  ;;  %v390_v58 = vld [vmem:[#allocation16 + $0x18] sm:$0xff] }
  0x36   :  { %259 = vmatpush.msra.mxu1 %v225_v11  ;;  %328 = vmatpush.msrb.mxu3 %v275_v19  ;;  %v389_v59 = vld [vmem:[#allocation16 + $0x10] sm:$0xff]  ;;  %v388_v60 = vld [vmem:[#allocation16 + $0x8] sm:$0xff]  ;;  %v387_v61 = vld [vmem:[#allocation16] sm:$0xff] }
  0x37   :  { %409 = vmatpush.msra.mxu2 %v400_v40  ;;  %v481_v3 = vld [vmem:[%s907_s10] ss:$0 sm:$0xff]  ;;  %s746_s10 = smov [#allocation17]  }
  0x38   :  { %329 = vmatpush.msrb.mxu3 %v274_v20  ;;  %v482_v13 = vld [vmem:[%s909_s12] ss:$0 sm:$0xff]  ;;  %s438_s18 = sshll.u32 %s746_s10, 4  ;;  %s439_s18 = int_to_ptr.vmem [resolvable:$true] %s438_s18 }
  0x39   :  { %410 = vmatpush.msra.mxu2 %v399_v41 }
  0x3a   :  { %330 = vmatpush.msrb.mxu3 %v273_v21  ;;  %465 = vmatmul.msk.f32.vlgmr.msrb.gmra.mxu0 %vm283_vm1, %v342_v37 }
  0x3b   :  { %462 = vmatmul.msk.f32.gmra.mxu3 %vm283_vm1, %v278_v22  ;;  %411 = vmatpush.msra.mxu2 %v398_v43 }
  0x3c   :  { %331 = vmatpush.msrb.mxu3 %v272_v23 }
  0x3d   :  { %412 = vmatpush.msra.mxu2 %v397_v44 }
  0x3e   :  { %332 = vmatpush.msrb.mxu3 %v271_v25 }
  0x3f   :  { %413 = vmatpush.msra.mxu2 %v396_v45 }
  0x40   :  { %333 = vmatpush.msrb.mxu3 %v270_v32 }
  0x41   :  { %414 = vmatpush.msra.mxu2 %v395_v46 }
  0x42   :  { %334 = vmatpush.msrb.mxu3 %v269_v34  ;;  %466 = vmatmul.msk.f32.gmra.mxu0 %vm283_vm1, %v343_v42 }
  0x43   :  { %415 = vmatpush.msra.mxu2 %v394_v47 }
  0x45   :  { %416 = vmatpush.msra.mxu2 %v393_v49 }
  0x47   :  { %417 = vmatpush.msra.mxu2 %v392_v50 }
  0x49   :  { %418 = vmatpush.msra.mxu2 %v391_v57 }
  0x4b   :  { %419 = vmatpush.msra.mxu2 %v390_v58 }
  0x4d   :  { %420 = vmatpush.msra.mxu2 %v389_v59 }
  0x4f   :  { %421 = vmatpush.msra.mxu2 %v388_v60 }
  0x51   :  { %422 = vmatpush.msra.mxu2 %v387_v61 }
  0xa7   :  { %v217_v26 = vpop.f32.mrf.mxu0 }
  0xa8   :  { %v218_v27 = vadd.f32 %v479_v24, %v217_v26 }
  0xaa   :  { %v223_v28 = vmax.f32 %v218_v27, 0.0 }
  0xac   :  { %459 = vmatmul.msk.f32.vlgmr.msra.gmra.mxu1 %vm237_vm2, %v223_v28 }
  0xaf   :  { %v220_v29 = vpop.f32.mrf.mxu0 }
  0xb0   :  { %v221_v30 = vadd.f32 %v479_v24, %v220_v29 }
  0xb2   :  { %v224_v31 = vmax.f32 %v221_v30, 0.0 }
  0xb4   :  { %460 = vmatmul.msk.f32.gmra.mxu1 %vm237_vm2, %v224_v31 }
  0xb6   :  { %v307_v62 = vpop.f32.mrf.mxu3 }
  0xb7   :  { %v371_v0 = vpop.f32.mrf.mxu0 }
  0xbe   :  { %v310_v63 = vpop.f32.mrf.mxu3 }
  0xbf   :  { %v374_v8 = vpop.f32.mrf.mxu0 }
 0x129   :  { %v261_v51 = vpop.f32.mrf.mxu1 }
 0x12a   :  { %v262_v52 = vadd.f32 %v480_v48, %v261_v51 }
 0x12c   :  { %v267_v53 = vmax.f32 %v262_v52, 0.0 }
 0x12e   :  { %463 = vmatmul.msk.f32.vlgmr.msrb.gmra.mxu3 %vm237_vm2, %v267_v53 }
 0x131   :  { %v264_v54 = vpop.f32.mrf.mxu1 }
 0x132   :  { %v265_v55 = vadd.f32 %v480_v48, %v264_v54 }
 0x134   :  { %v268_v56 = vmax.f32 %v265_v55, 0.0 }
 0x136   :  { %464 = vmatmul.msk.f32.gmra.mxu3 %vm237_vm2, %v268_v56 }
 0x1b1   :  { %v336_v1 = vpop.f32.mrf.mxu3 }
 0x1b2   :  { %v337_v2 = vadd.f32 %v336_v1, %v307_v62 }
 0x1b4   :  { %v377_v4 = vadd.f32 %v371_v0, %v337_v2 }
 0x1b6   :  { %v383_v5 = vadd.f32 %v481_v3, %v377_v4 }
 0x1b8   :  { %v385_v6 = vmax.f32 %v383_v5, 0.0 }
 0x1b9   :  { %v339_v7 = vpop.f32.mrf.mxu3 }
 0x1ba   :  { %v340_v9 = vadd.f32 %v339_v7, %v310_v63  ;;  %423 = vmatmul.f32.vlgmr.msra.gmra.mxu2 %v385_v6 }
 0x1bc   :  { %v378_v10 = vadd.f32 %v374_v8, %v340_v9 }
 0x1be   :  { %v384_v11 = vadd.f32 %v481_v3, %v378_v10 }
 0x1c0   :  { %v386_v12 = vmax.f32 %v384_v11, 0.0 }
 0x1c2   :  { %426 = vmatmul.f32.gmra.mxu2 %v386_v12 }
 0x23d   :  { %v424_v14 = vpop.f32.mrf.mxu2 }
 0x23e   :  { %v425_v15 = vadd.f32 %v482_v13, %v424_v14 }
 0x240   :  { %v430_v16 = vmax.f32 %v425_v15, 0.0 }
 0x242   :  { %432 = vst [vmem:[#allocation17] sm:$0xff] %v430_v16 }
 0x245   :  { %v427_v17 = vpop.f32.mrf.mxu2 }
 0x246   :  { %v428_v18 = vadd.f32 %v482_v13, %v427_v17 }
 0x248   :  { %v431_v19 = vmax.f32 %v428_v18, 0.0 }
 0x24a   :  { %433 = vst [vmem:[#allocation17 + $0x8] sm:$0xff] %v431_v19 }
 0x24b   :  { %446 = dma.vmem_to_hbm [thread:$0]  %s439_s18, 256, %s441_s20, [#allocation4], %s736_s16, %s736_s16, %s737_s17  }
 0x24c   :  { %733 = dma.done.wait [#allocation4], 256  }
 0x24d   :  { %734 = vsyncadd [#allocation4], 4294967040 }
 0x24e   :  { %451 = vsyncpa [#allocation3], 1 }
 0x24f   :  { %452 = vsyncpa [#allocation6], 1 }
 0x250   :  { %453 = vsyncpa [#allocation9], 1 }
 0x251   :  { %454 = vsyncpa [#allocation12], 1 }
 0x252   :  { %455 = vsyncpa [#allocation15], 1 }
 0x253   :  { %456 = vsyncpa [#allocation4], 1 }

</bundles_post_ra>
